<compile_context>
chip_gen: v7x
topology: tpu7x:2x2x1
jax: 0.10.0
libtpu: 0.0.40
codegen_flags: <defaults>
</compile_context>

<pallas_src>
import functools

import numpy as np
import jax
import jax.numpy as jnp
from jax import lax
from jax.experimental import pallas as pl
from jax.experimental.pallas import tpu as pltpu

EPS = 1e-5


def _round_up(x, m):
    return ((x + m - 1) // m) * m


def _cdiv(a, b):
    return -(-a // b)


# --------------------------------------------------------------------------- #
# Pallas kernel: (Cout, K) @ (K, tile) matmul + folded BN/ReLU epilogue
# --------------------------------------------------------------------------- #
def _conv_bn_relu_kernel(p_ref, w_ref, scale_ref, bias_ref, o_ref, *, use_relu):
    """p_ref    : (K, T)     im2col patches, lane-dense tile
       w_ref    : (Cout, K)  conv weight, resident across grid steps
       scale_ref: (Cout, 1)  gamma / sqrt(var + eps)
       bias_ref : (Cout, 1)  beta - mean * scale
       o_ref    : (Cout, T)
    """
    y = jnp.dot(w_ref[...], p_ref[...], preferred_element_type=jnp.float32)
    y = y * scale_ref[...] + bias_ref[...]          # BN epilogue (VPU, free filler)
    if use_relu:
        y = jnp.maximum(y, 0.0)
    o_ref[...] = y.astype(o_ref.dtype)


# --------------------------------------------------------------------------- #
# VMEM-aware tile selection
# --------------------------------------------------------------------------- #
def _vmem_budget_bytes():
    """~70% of physical VMEM (=> ~45 MiB on v7x, ~90 MiB on v5e/v6e)."""
    try:
        cap = pltpu.get_tpu_info().vmem_capacity_bytes
    except Exception:
        cap = 64 << 20          # conservative default: v7x per-TensorCore VMEM
    return int(cap * 0.70)


def _step_vmem_bytes(k_pad, cout, tile, out_bytes, w_bufs):
    patch = 2 * k_pad * tile * 2            # double-buffered bf16 patch block
    outb = 2 * cout * tile * out_bytes      # double-buffered output block
    wgt = w_bufs * (cout * k_pad * 2 + 2 * cout * 4)   # weight + scale/bias
    return patch + outb + wgt


def _select_tile(k_pad, cout, rows, lanes_per_row, out_bytes, w_bufs, budget):
    """Largest lane tile within the VMEM budget; prefer >=4 grid steps
    (pipelining overlap + both v7x TensorCores) but never shrink below 512
    just for step count.  Padding waste is bounded by one tile per row-slab."""
    lanes_aligned = _round_up(max(lanes_per_row, 1), 128)
    fits = [t for t in (2048, 1024, 512, 256, 128)
            if _step_vmem_bytes(k_pad, cout, t, out_bytes, w_bufs) <= budget]
    if not fits:
        fits = [128]            # TODO(synk): huge-K layers want a K-split instead
    capped = [t for t in fits if t <= lanes_aligned] or [min(fits)]
    for t in capped:            # descending
        steps = rows * _cdiv(lanes_per_row, t)
        if steps >= 4 or t <= 512:
            return t
    return capped[-1]


# --------------------------------------------------------------------------- #
# Wrapper: im2col layout plumbing + pallas_call
# --------------------------------------------------------------------------- #
def conv_bn_relu(x_nchw, w_oihw, gamma, beta, mean, var, *,
                 stride=1, padding=1, use_relu=True, eps=EPS,
                 compute_dtype=jnp.bfloat16, out_dtype=None):
    """Fused Conv2d(no bias) -> BatchNorm2d(eval) -> ReLU.  NCHW in / NCHW out."""
    N, Cin, H, W = x_nchw.shape
    Cout, _, KH, KW = w_oihw.shape
    Ho = (H + 2 * padding - KH) // stride + 1
    Wo = (W + 2 * padding - KW) // stride + 1
    HWo = Ho * Wo
    K = Cin * KH * KW
    K_pad = _round_up(K, 16)                     # bf16 packs 16 rows per vreg group
    if out_dtype is None:
        out_dtype = x_nchw.dtype
    out_bytes = jnp.dtype(out_dtype).itemsize

    # ---- im2col in bf16 (cast BEFORE materializing the 9x patch tensor) ---- #
    x_c = x_nchw.astype(compute_dtype)
    xpad = jnp.pad(x_c, ((0, 0), (0, 0), (padding, padding), (padding, padding)))
    taps = []
    for i in range(KH):
        for j in range(KW):
            taps.append(lax.slice(
                xpad, (0, 0, i, j),
                (N, Cin, i + (Ho - 1) * stride + 1, j + (Wo - 1) * stride + 1),
                (1, 1, stride, stride)))                       # (N, Cin, Ho, Wo)
    patches = jnp.stack(taps, axis=2).reshape(N, K, HWo)       # K order = (cin,kh,kw)
    if K_pad > K:
        patches = jnp.pad(patches, ((0, 0), (0, K_pad - K), (0, 0)))

    w_mat = w_oihw.astype(compute_dtype).reshape(Cout, K)      # same (cin,kh,kw) order
    if K_pad > K:
        w_mat = jnp.pad(w_mat, ((0, 0), (0, K_pad - K)))

    # ---- fold BatchNorm (eval mode) into per-channel scale / bias ---------- #
    inv_std = 1.0 / jnp.sqrt(var.astype(jnp.float32) + eps)
    scale_vec = gamma.astype(jnp.float32) * inv_std
    bias_vec = beta.astype(jnp.float32) - mean.astype(jnp.float32) * scale_vec
    scale = scale_vec.reshape(Cout, 1)
    bias = bias_vec.reshape(Cout, 1)

    # ---- VMEM budget, weight buffering, kernel ------------------------------ #
    budget = _vmem_budget_bytes()
    big_weight = (Cout * K_pad * 2) > (4 << 20)
    w_bufs = 1 if big_weight else 2
    # Constant-index weight block: drop the dead second pipeline buffer when big.
    weight_pipe = dict(pipeline_mode=pl.Buffered(1)) if big_weight else {}

    kernel = functools.partial(_conv_bn_relu_kernel, use_relu=use_relu)

    if HWo < 512:
        # ---- packed-M layout: lanes = (n, ho, wo), best for tiny spatial ---- #
        M = N * HWo
        patches2 = jnp.transpose(patches, (1, 0, 2)).reshape(K_pad, M)
        tile = _select_tile(K_pad, Cout, 1, M, out_bytes, w_bufs, budget)
        m_pad = _round_up(M, tile)
        if m_pad > M:
            patches2 = jnp.pad(patches2, ((0, 0), (0, m_pad - M)))
        step_bytes = _step_vmem_bytes(K_pad, Cout, tile, out_bytes, w_bufs)
        vmem_limit = int(max(32 << 20, min(budget, step_bytes + (16 << 20))))
        cost = pl.CostEstimate(
            flops=2 * Cout * K_pad * m_pad,
            transcendentals=0,
            bytes_accessed=(K_pad * m_pad * 2 + Cout * K_pad * 2
                            + Cout * m_pad * out_bytes))

        out = pl.pallas_call(
            kernel,
            out_shape=jax.ShapeDtypeStruct((Cout, m_pad), out_dtype),
            grid_spec=pltpu.PrefetchScalarGridSpec(
                num_scalar_prefetch=0,
                grid=(m_pad // tile,),
                in_specs=[
                    pl.BlockSpec((K_pad, tile), lambda m: (0, m)),     # patches
                    pl.BlockSpec((Cout, K_pad), lambda m: (0, 0),      # weight
                                 **weight_pipe),
                    pl.BlockSpec((Cout, 1), lambda m: (0, 0)),         # scale
                    pl.BlockSpec((Cout, 1), lambda m: (0, 0)),         # bias
                ],
                out_specs=pl.BlockSpec((Cout, tile), lambda m: (0, m)),
            ),
            compiler_params=pltpu.CompilerParams(
                dimension_semantics=("parallel",),
                vmem_limit_bytes=vmem_limit),
            cost_estimate=cost,
        )(patches2, w_mat, scale, bias)

        out = out[:, :M].reshape(Cout, N, Ho, Wo)
        return jnp.transpose(out, (1, 0, 2, 3))                        # -> NCHW

    # ---- per-image NCHW layout: grid = (N, HW tiles), no transposes -------- #
    tile = _select_tile(K_pad, Cout, N, HWo, out_bytes, w_bufs, budget)
    hw_pad = _round_up(HWo, tile)
    if hw_pad > HWo:
        patches = jnp.pad(patches, ((0, 0), (0, 0), (0, hw_pad - HWo)))
    step_bytes = _step_vmem_bytes(K_pad, Cout, tile, out_bytes, w_bufs)
    vmem_limit = int(max(32 << 20, min(budget, step_bytes + (16 << 20))))
    cost = pl.CostEstimate(
        flops=2 * Cout * K_pad * N * hw_pad,
        transcendentals=0,
        bytes_accessed=(N * K_pad * hw_pad * 2 + Cout * K_pad * 2
                        + N * Cout * hw_pad * out_bytes))

    out = pl.pallas_call(
        kernel,
        out_shape=jax.ShapeDtypeStruct((N, Cout, hw_pad), out_dtype),
        grid_spec=pltpu.PrefetchScalarGridSpec(
            num_scalar_prefetch=0,
            grid=(N, hw_pad // tile),
            in_specs=[
                pl.BlockSpec((pl.Squeezed(), K_pad, tile),
                             lambda n, m: (n, 0, m)),                  # patches
                pl.BlockSpec((Cout, K_pad), lambda n, m: (0, 0),       # weight
                             **weight_pipe),
                pl.BlockSpec((Cout, 1), lambda n, m: (0, 0)),          # scale
                pl.BlockSpec((Cout, 1), lambda n, m: (0, 0)),          # bias
            ],
            out_specs=pl.BlockSpec((pl.Squeezed(), Cout, tile),
                                   lambda n, m: (n, 0, m)),
        ),
        compiler_params=pltpu.CompilerParams(
            dimension_semantics=("parallel", "parallel"),
            vmem_limit_bytes=vmem_limit),
        cost_estimate=cost,
    )(patches, w_mat, scale, bias)

    out = out[:, :, :HWo].reshape(N, Cout, Ho, Wo)                     # no transpose
    return out


conv_bn_relu_jit = jax.jit(
    conv_bn_relu,
    static_argnames=("stride", "padding", "use_relu", "eps",
                     "compute_dtype", "out_dtype"))


# --------------------------------------------------------------------------- #
# Pure-JAX reference (correctness check)
# --------------------------------------------------------------------------- #
def conv_bn_relu_ref(x, w, gamma, beta, mean, var, *,
                     stride=1, padding=1, use_relu=True, eps=EPS):
    y = lax.conv_general_dilated(
        x, w, (stride, stride), [(padding, padding), (padding, padding)],
        dimension_numbers=("NCHW", "OIHW", "NCHW"),
        precision=lax.Precision.HIGHEST)
    inv = 1.0 / jnp.sqrt(var + eps)
    y = (y - mean[None, :, None, None]) * inv[None, :, None, None]
    y = y * gamma[None, :, None, None] + beta[None, :, None, None]
    if use_relu:
        y = jnp.maximum(y, 0.0)
    return y


# --------------------------------------------------------------------------- #
if __name__ == "__main__":
    key = jax.random.PRNGKey(0)
    kx, kw, kg, kb, km, kv, kx2 = jax.random.split(key, 7)

    N, C_IN, C_OUT = 2, 4, 16
    w = jax.random.normal(kw, (C_OUT, C_IN, 3, 3), jnp.float32) / np.sqrt(C_IN * 9)
    gamma = 1.0 + 0.1 * jax.random.normal(kg, (C_OUT,), jnp.float32)
    beta = 0.1 * jax.random.normal(kb, (C_OUT,), jnp.float32)
    mean = 0.1 * jax.random.normal(km, (C_OUT,), jnp.float32)
    var = 1.0 + 0.1 * jax.random.uniform(kv, (C_OUT,), jnp.float32)

    # --- case 1: small spatial (16x16) -> packed-M layout, with ReLU --------- #
    x1 = jax.random.normal(kx, (N, C_IN, 16, 16), jnp.float32)
    out1 = jax.block_until_ready(conv_bn_relu_jit(x1, w, gamma, beta, mean, var))
    ref1 = jax.block_until_ready(conv_bn_relu_ref(x1, w, gamma, beta, mean, var))
    assert out1.shape == (N, C_OUT, 16, 16), out1.shape
    np.testing.assert_allclose(np.asarray(out1), np.asarray(ref1),
                               rtol=2e-2, atol=2e-2)

    # --- case 1b: same shape, use_relu=False --------------------------------- #
    out1b = jax.block_until_ready(
        conv_bn_relu_jit(x1, w, gamma, beta, mean, var, use_relu=False))
    ref1b = jax.block_until_ready(
        conv_bn_relu_ref(x1, w, gamma, beta, mean, var, use_relu=False))
    np.testing.assert_allclose(np.asarray(out1b), np.asarray(ref1b),
                               rtol=2e-2, atol=2e-2)

    # --- case 2: larger spatial (32x32) -> direct NCHW output layout --------- #
    x2 = jax.random.normal(kx2, (N, C_IN, 32, 32), jnp.float32)
    out2 = jax.block_until_ready(conv_bn_relu_jit(x2, w, gamma, beta, mean, var))
    ref2 = jax.block_until_ready(conv_bn_relu_ref(x2, w, gamma, beta, mean, var))
    assert out2.shape == (N, C_OUT, 32, 32), out2.shape
    np.testing.assert_allclose(np.asarray(out2), np.asarray(ref2),
                               rtol=2e-2, atol=2e-2)

    print("KERNEL_OK")
</pallas_src>

<mosaic_0001>
module attributes {stable_mosaic.version = 11 : i64} {
  func.func @_conv_bn_relu_kernel(%arg0: i32, %arg1: memref<48x512xbf16, #tpu.memory_space<vmem>>, %arg2: memref<16x48xbf16, #tpu.memory_space<vmem>>, %arg3: memref<16x1xf32, #tpu.memory_space<vmem>>, %arg4: memref<16x1xf32, #tpu.memory_space<vmem>>, %arg5: memref<16x512xf32, #tpu.memory_space<vmem>>) attributes {dimension_semantics = [#tpu.dimension_semantics<parallel>], iteration_bounds = array<i64: 1>, scalar_prefetch = 0 : i64, scratch_operands = 0 : i64, tpu.core_type = #tpu.core_type<tc>, window_params = [{transform_indices = @transform_0, window_bounds = array<i64: 48, 512>}, {pipeline_mode = #tpu.pipeline_mode<synchronous>, transform_indices = @transform_1, window_bounds = array<i64: 16, 48>}, {pipeline_mode = #tpu.pipeline_mode<synchronous>, transform_indices = @transform_2, window_bounds = array<i64: 16, 1>}, {pipeline_mode = #tpu.pipeline_mode<synchronous>, transform_indices = @transform_3, window_bounds = array<i64: 16, 1>}, {transform_indices = @transform_4, window_bounds = array<i64: 16, 512>}]} {
    %c0 = arith.constant 0 : index
    %c0_0 = arith.constant 0 : index
    %0 = vector.load %arg2[%c0, %c0_0] : memref<16x48xbf16, #tpu.memory_space<vmem>>, vector<16x48xbf16>
    %c0_1 = arith.constant 0 : index
    %c0_2 = arith.constant 0 : index
    %1 = vector.load %arg1[%c0_1, %c0_2] : memref<48x512xbf16, #tpu.memory_space<vmem>>, vector<48x512xbf16>
    %cst = arith.constant dense<0.000000e+00> : vector<16x512xf32>
    %2 = tpu.matmul %0, %1, %cst {dimension_numbers = #tpu.dot_dimension_numbers<[1], [0], [0], [1], [0, 0, 1, 1], [], []>} : vector<16x48xbf16>, vector<48x512xbf16>, vector<16x512xf32> -> vector<16x512xf32>
    %c0_3 = arith.constant 0 : index
    %c0_4 = arith.constant 0 : index
    %3 = vector.load %arg3[%c0_3, %c0_4] : memref<16x1xf32, #tpu.memory_space<vmem>>, vector<16x1xf32>
    %4 = vector.broadcast %3 : vector<16x1xf32> to vector<16x512xf32>
    %5 = arith.mulf %2, %4 : vector<16x512xf32>
    %c0_5 = arith.constant 0 : index
    %c0_6 = arith.constant 0 : index
    %6 = vector.load %arg4[%c0_5, %c0_6] : memref<16x1xf32, #tpu.memory_space<vmem>>, vector<16x1xf32>
    %7 = vector.broadcast %6 : vector<16x1xf32> to vector<16x512xf32>
    %8 = arith.addf %5, %7 : vector<16x512xf32>
    %cst_7 = arith.constant 0.000000e+00 : f32
    %9 = vector.broadcast %cst_7 : f32 to vector<16x512xf32>
    %10 = arith.maximumf %8, %9 : vector<16x512xf32>
    %c0_8 = arith.constant 0 : index
    %c0_9 = arith.constant 0 : index
    %11 = vector.load %arg5[%c0_8, %c0_9] : memref<16x512xf32, #tpu.memory_space<vmem>>, vector<16x512xf32>
    tpu.vector_store %arg5[%c0_8, %c0_9], %10 {strides = array<i32>} : memref<16x512xf32, #tpu.memory_space<vmem>>, vector<16x512xf32>,
    return
  }
  func.func @transform_0(%arg0: i32) -> (i32, i32) {
    %c0_i32 = arith.constant 0 : i32
    %c0_i32_0 = arith.constant 0 : i32
    return %c0_i32, %arg0 : i32, i32
  }
  func.func @transform_1(%arg0: i32) -> (i32, i32) {
    %c0_i32 = arith.constant 0 : i32
    %c0_i32_0 = arith.constant 0 : i32
    %c0_i32_1 = arith.constant 0 : i32
    return %c0_i32, %c0_i32_0 : i32, i32
  }
  func.func @transform_2(%arg0: i32) -> (i32, i32) {
    %c0_i32 = arith.constant 0 : i32
    %c0_i32_0 = arith.constant 0 : i32
    %c0_i32_1 = arith.constant 0 : i32
    return %c0_i32, %c0_i32_0 : i32, i32
  }
  func.func @transform_3(%arg0: i32) -> (i32, i32) {
    %c0_i32 = arith.constant 0 : i32
    %c0_i32_0 = arith.constant 0 : i32
    %c0_i32_1 = arith.constant 0 : i32
    return %c0_i32, %c0_i32_0 : i32, i32
  }
  func.func @transform_4(%arg0: i32) -> (i32, i32) {
    %c0_i32 = arith.constant 0 : i32
    %c0_i32_0 = arith.constant 0 : i32
    return %c0_i32, %arg0 : i32, i32
  }
}

</mosaic_0001>

<bundles_post_ra>
// kernel: conv_bn_relu.1
= control target key start
LH: loop header
LB: loop body
LE: loop exit
PB: predicated region body
PF: predicated region fallthrough
CT: control target
= control target key end

     0   :  { %v284_v1 = vmov 0   ;;  %vm97_vm0 = vcmask 392192   ;;  %s385_s0 = inlined_call_operand.vmem [shape: bf16[48,512], index: 0, kind: input, shape index: {}]   ;;  %s386_s2 = inlined_call_operand.vmem [shape: f32[16,1], index: 2, kind: input, shape index: {}]   ;;  %s387_s3 = inlined_call_operand.vmem [shape: f32[16,1], index: 3, kind: input, shape index: {}]   ;;  %s388_s1 = inlined_call_operand.vmem [shape: bf16[16,48], index: 1, kind: input, shape index: {}]   ;;  %s389_s4 = inlined_call_operand.vmem [shape: f32[16,512], index: 4, kind: output, shape index: {}]  }
   0x1   :  { %v265_v0 = vld [vmem:[%s385_s0 + $0x4] ss:$16 sps:$4 sm:$0xff]   ;;  %133 = vmatprep.mubr.bf16.mxu0 %v284_v1  ;;  %176 = vmatprep.mubr.bf16.mxu1 %v284_v1  ;;  %v267_v2 = vld [vmem:[%s385_s0 + $0xc] ss:$16 sps:$4 sm:$0xff]   ;;  %v269_v3 = vld [vmem:[%s385_s0] ss:$16 sps:$4 sm:$0xff]  }
   0x2   :  { %263 = vset.pattern.permute.xlu0 %v284_v1  ;;  %264 = vset.pattern.permute.xlu1 %v284_v1  ;;  %v270_v4 = vld [vmem:[%s385_s0 + $0x8] ss:$16 sps:$4 sm:$0xff]   ;;  %v271_v5 = vld [vmem:[%s385_s0 + $0x24] ss:$16 sps:$4 sm:$0xff]   ;;  %v273_v6 = vld [vmem:[%s385_s0 + $0x2c] ss:$16 sps:$4 sm:$0xff]  }
   0x3   :  { %101 = vmatprep.subr.bf16.mxu0 %v265_v0  ;;  %144 = vmatprep.subr.bf16.mxu1 %v267_v2  ;;  %v275_v7 = vld [vmem:[%s385_s0 + $0x20] ss:$16 sps:$4 sm:$0xff]   ;;  %v276_v8 = vld [vmem:[%s385_s0 + $0x28] ss:$16 sps:$4 sm:$0xff]   ;;  %v277_v9 = vld [vmem:[%s385_s0 + $0x44] ss:$16 sps:$4 sm:$0xff]  }
   0x4   :  { %102 = vmatpush1.bf16.msra.mxu0 %v269_v3  ;;  %145 = vmatpush1.bf16.msra.mxu1 %v270_v4  ;;  %v279_v10 = vld [vmem:[%s385_s0 + $0x4c] ss:$16 sps:$4 sm:$0xff]   ;;  %v281_v11 = vld [vmem:[%s385_s0 + $0x40] ss:$16 sps:$4 sm:$0xff]   ;;  %v282_v12 = vld [vmem:[%s385_s0 + $0x48] ss:$16 sps:$4 sm:$0xff]  }
   0x5   :  { %103 = vmatprep.subr.bf16.mxu0 %v271_v5  ;;  %146 = vmatprep.subr.bf16.mxu1 %v273_v6  ;;  %v187_v13 = vld [vmem:[%s386_s2] sm:$0xff]  ;;  %v188_v16 = vld [vmem:[%s386_s2 + $0x8] sm:$0xff] }
   0x6   :  { %v207_v14 = vld [vmem:[%s387_s3] sm:$0xff]  ;;  %191 = vperm.xlu0 %263, %v187_v13   ;;  %v208_v17 = vld [vmem:[%s387_s3 + $0x8] sm:$0xff] }
   0x7   :  { %211 = vperm.xlu1 %264, %v207_v14   ;;  %v283_v15 = vld [vmem:[%s388_s1] sm:$0xff]  }
   0x8   :  { %104 = vmatpush1.bf16.msra.mxu0 %v275_v7  ;;  %147 = vmatpush1.bf16.msra.mxu1 %v276_v8 }
   0x9   :  { %105 = vmatprep.subr.bf16.mxu0 %v277_v9  ;;  %148 = vmatprep.subr.bf16.mxu1 %v279_v10 }
   0xa   :  { %196 = vperm.xlu0 %263, %v188_v16  }
   0xb   :  { %216 = vperm.xlu1 %264, %v208_v17  }
   0xc   :  { %106 = vmatpush1.bf16.msra.mxu0 %v281_v11  ;;  %149 = vmatpush1.bf16.msra.mxu1 %v282_v12 }
   0xf   :  { %260 = vmatmul.mubr.msk.bf16.vlgmr.msra.gmra.mrb[0].mxu0 %vm97_vm0, %v283_v15  ;;  %261 = vmatmul.mubr.msk.bf16.vlgmr.msra.gmra.mrb[0].mxu1 %vm97_vm0, %v283_v15 }
  0x85   :  { %v192_v18 = vpop.permute.xlu0 %191 }
  0x86   :  { %v212_v19 = vpop.permute.xlu1 %211 }
  0x89   :  { %v197_v20 = vpop.permute.xlu0 %196 }
  0x8a   :  { %v217_v37 = vpop.permute.xlu1 %216 }
  0xe2   :  { %v135_v21 = vpop.f32.mrb[0].mxu0  ;;  %v178_v22 = vpop.f32.mrb[0].mxu1 }
  0xe3   :  { %v199_v23 = vmul.f32 %v192_v18, %v135_v21  ;;  %v201_v24 = vmul.f32 %v192_v18, %v178_v22  ;;  %v137_v25 = vpop.f32.mrb[1].mxu0  ;;  %v180_v26 = vpop.f32.mrb[1].mxu1 }
  0xe4   :  { %v200_v27 = vmul.f32 %v192_v18, %v137_v25  ;;  %v202_v28 = vmul.f32 %v192_v18, %v180_v26  ;;  %v139_v29 = vpop.f32.mrb[2].mxu0  ;;  %v182_v30 = vpop.f32.mrb[2].mxu1 }
  0xe5   :  { %v219_v31 = vadd.f32 %v212_v19, %v199_v23  ;;  %v221_v32 = vadd.f32 %v212_v19, %v201_v24  ;;  %v203_v33 = vmul.f32 %v197_v20, %v139_v29  ;;  %v205_v34 = vmul.f32 %v197_v20, %v182_v30  ;;  %v141_v35 = vpop.f32.mrb[3].mxu0  ;;  %v184_v36 = vpop.f32.mrb[3].mxu1 }
  0xe6   :  { %v220_v38 = vadd.f32 %v212_v19, %v200_v27  ;;  %v222_v39 = vadd.f32 %v212_v19, %v202_v28  ;;  %v204_v40 = vmul.f32 %v197_v20, %v141_v35  ;;  %v206_v41 = vmul.f32 %v197_v20, %v184_v36 }
  0xe7   :  { %v227_v42 = vmax.f32 %v219_v31, 0.0  ;;  %v229_v43 = vmax.f32 %v221_v32, 0.0  ;;  %v223_v44 = vadd.f32 %v217_v37, %v203_v33  ;;  %v225_v45 = vadd.f32 %v217_v37, %v205_v34 }
  0xe8   :  { %v228_v46 = vmax.f32 %v220_v38, 0.0  ;;  %v230_v47 = vmax.f32 %v222_v39, 0.0  ;;  %v224_v48 = vadd.f32 %v217_v37, %v204_v40  ;;  %v226_v49 = vadd.f32 %v217_v37, %v206_v41 }
  0xe9   :  { %235 = vst [vmem:[%s389_s4] sm:$0xff] %v227_v42  ;;  %237 = vst [vmem:[%s389_s4 + $0x10] sm:$0xff] %v229_v43  ;;  %v231_v50 = vmax.f32 %v223_v44, 0.0  ;;  %v233_v51 = vmax.f32 %v225_v45, 0.0 }
  0xea   :  { %236 = vst [vmem:[%s389_s4 + $0x8] sm:$0xff] %v228_v46  ;;  %238 = vst [vmem:[%s389_s4 + $0x18] sm:$0xff] %v230_v47  ;;  %v232_v52 = vmax.f32 %v224_v48, 0.0  ;;  %v234_v53 = vmax.f32 %v226_v49, 0.0 }
  0xeb   :  { %239 = vst [vmem:[%s389_s4 + $0x20] sm:$0xff] %v231_v50  ;;  %241 = vst [vmem:[%s389_s4 + $0x30] sm:$0xff] %v233_v51 }
  0xec   :  { %240 = vst [vmem:[%s389_s4 + $0x28] sm:$0xff] %v232_v52  ;;  %242 = vst [vmem:[%s389_s4 + $0x38] sm:$0xff] %v234_v53 }

</bundles_post_ra>
